<compile_context>
chip_gen: v7x
topology: tpu7x:2x2x1
jax: 0.10.0
libtpu: 0.0.40
codegen_flags: <defaults>
</compile_context>

<pallas_src>
import math
import numpy as np
import jax
import jax.numpy as jnp
from jax.experimental import pallas as pl
from jax.experimental.pallas import tpu as pltpu


# ------------- host-side construction of the folded resample matrices (glue) -------------

def _sinc(x):
    x = np.asarray(x, dtype=np.float64)
    safe = np.where(x == 0, 1.0, x)
    return np.where(x == 0, 1.0, np.sin(np.pi * safe) / (np.pi * safe))


def _lanczos_kernel(ratio, a=2):
    # ramp(ratio, a) followed by lanczos(x, a), exactly as in the PyTorch reference.
    n = math.ceil(a / ratio + 1)
    out = np.arange(n, dtype=np.float64) * ratio
    x = np.concatenate([-out[1:][::-1], out])[1:-1]
    cond = np.logical_and(-a < x, x < a)
    k = np.where(cond, _sinc(x) * _sinc(x / a), 0.0)
    return k / k.sum()


def _lanczos_matrix(size, cut_size):
    """(size, size): reflect-pad + 1D lanczos anti-alias conv; identity if no downsample."""
    if not (cut_size < size):
        return np.eye(size, dtype=np.float64)
    k = _lanczos_kernel(cut_size / size, a=2)
    K = k.shape[0]
    pad = (K - 1) // 2
    M = np.zeros((size, size), dtype=np.float64)
    for i in range(size):
        for t in range(K):
            p = i + t - pad
            if p < 0:            # PyTorch 'reflect' padding (no edge duplication)
                p = -p
            elif p >= size:
                p = 2 * (size - 1) - p
            M[i, p] += k[t]
    return M


def _cubic_w(x, A=-0.75):
    x = abs(x)
    if x <= 1.0:
        return (A + 2.0) * x ** 3 - (A + 3.0) * x ** 2 + 1.0
    if x < 2.0:
        return A * x ** 3 - 5.0 * A * x ** 2 + 8.0 * A * x - 4.0 * A
    return 0.0


def _bicubic_matrix(in_size, out_size):
    """(out_size, in_size): bicubic interpolation, align_corners=True (PyTorch A=-0.75)."""
    B = np.zeros((out_size, in_size), dtype=np.float64)
    scale = (in_size - 1) / (out_size - 1) if out_size > 1 else 0.0
    for i in range(out_size):
        x = i * scale
        x0 = int(np.floor(x))
        t = x - x0
        for m in range(-1, 3):
            idx = min(max(x0 + m, 0), in_size - 1)
            B[i, idx] += _cubic_w(m - t)
    return B


def _resample_matrix(size, cut_size):
    """(cut_size, size): lanczos anti-alias then bicubic align_corners resample."""
    return _bicubic_matrix(size, cut_size) @ _lanczos_matrix(size, cut_size)


# --------------------------------- Pallas kernel ---------------------------------

def _cutout_kernel(x_ref, kt_ref, fac_ref, exp_ref, noise_ref, out_ref):
    # One lane-dense MXU matmul computes ALL cutouts for ALL images/channels:
    #   (NC, H*W) @ (H*W, cutn*cs*cs) -> (NC, cutn*cs*cs)
    res = jnp.dot(x_ref[...], kt_ref[...], preferred_element_type=jnp.float32)
    res = jnp.clip(res, 0.0, 1.0)                 # clamp to [0,1] image range (fwd)
    # Broadcast the per-(image, cutout) noise factor across each cutout's cs*cs lanes
    # with a tiny constant expansion matmul (padded contraction of 8); the fac*noise
    # FMA stays in-kernel as free VPU filler under the MXU — no wrapper pre-scaling.
    fac_b = jnp.dot(fac_ref[...], exp_ref[...], preferred_element_type=jnp.float32)
    out_ref[...] = res + fac_b * noise_ref[...]   # full-width 256-lane store


def make_cutouts(x, kt, fac_pad, expand, noise, cut_size, cutn):
    """clamp(resample(crop(x)), 0, 1) + fac*noise for every cutout, in one kernel step."""
    N, C, H, W = x.shape
    NC = N * C
    css = cut_size * cut_size
    x_flat = x.reshape(NC, H * W)                 # lane-dense image slab (H*W on lanes)
    out_flat = pl.pallas_call(
        _cutout_kernel,
        out_shape=jax.ShapeDtypeStruct((NC, cutn * css), jnp.float32),
        # Whole problem (~280 KiB) is VMEM-resident: no grid, no pipelining, a single
        # invocation -> no per-step (~600 cycle) pipeline overhead.
        in_specs=[pl.BlockSpec(memory_space=pltpu.MemorySpace.VMEM)] * 5,
        out_specs=pl.BlockSpec(memory_space=pltpu.MemorySpace.VMEM),
    )(x_flat, kt, fac_pad, expand, noise)
    # Back to the PyTorch layout: the cutn per-cutout batches concatenated along dim 0.
    out = out_flat.reshape(N, C, cutn, cut_size, cut_size)
    return out.transpose(2, 0, 1, 3, 4).reshape(cutn * N, C, cut_size, cut_size)


# --------------------------------------- main ---------------------------------------

if __name__ == "__main__":
    # Module config (cutout prep of MultiClipLoss; cut_size = perceptor input resolution).
    cut_size, cutn, cut_pow = 8, 4, 1.0
    noise_fac = 0.1

    # Small NCHW image batch consistent with the forward.
    N, C, H, W = 2, 3, 16, 16
    NC, css = N * C, cut_size * cut_size
    key = jax.random.PRNGKey(0)
    k_img, k_noise = jax.random.split(key)
    x = jax.random.uniform(k_img, (N, C, H, W), dtype=jnp.float32)

    sideY, sideX = H, W
    min_size_width = min(sideX, sideY)
    lower_bound = float(cut_size / min_size_width)

    # Deterministic host-side sampling of cutout sizes / offsets (torch RNG in the original).
    rng = np.random.default_rng(0)
    a_h = np.zeros((cutn, cut_size, sideY), dtype=np.float64)   # crop+lanczos+bicubic along Y
    a_w = np.zeros((cutn, cut_size, sideX), dtype=np.float64)   # crop+lanczos+bicubic along X
    for ii in range(cutn):
        randsize = float(np.clip(rng.normal(0.8, 0.3), lower_bound, 1.0))
        size_mult = float(np.clip(randsize ** cut_pow, lower_bound, 1.0))
        size = int(min_size_width * size_mult)
        offsetx = int(rng.integers(0, sideX - size + 1))
        offsety = int(rng.integers(0, sideY - size + 1))
        R = _resample_matrix(size, cut_size)                    # (cs, size)
        a_h[ii, :, offsety:offsety + size] = R
        a_w[ii, :, offsetx:offsetx + size] = R

    # Fold the separable Y/X resamplers of each cutout into one Kronecker matrix and
    # stack:  K^T : (H*W, cutn*cs*cs) = (256, 256)  — a single 256-wide MXU operand.
    kt = np.stack([np.kron(a_h[i], a_w[i]) for i in range(cutn)])          # (cutn, cs*cs, H*W)
    kt = jnp.asarray(kt.reshape(cutn * css, H * W).T.astype(np.float32))   # (H*W, cutn*cs*cs)

    # TODO(synk): the CLIP image/text encoders (perceptors), Kornia random augs,
    # CLIP mean/std normalize, ReplaceGrad / checkpoint (backward-only tricks) and the
    # prompt spherical-distance loss have no clean standalone Pallas equivalent here
    # and are omitted (identity / external).

    # noise_fac branch: one uniform factor per (cutout, image); kept as a tiny (NC, 8)
    # VMEM operand (cutn padded to the f32 sublane tile) and broadcast to the lane-dense
    # layout INSIDE the kernel via a constant expansion matrix.
    facs_rows = rng.uniform(0.0, noise_fac, size=(cutn, N)).astype(np.float32)
    fac_nc = np.transpose(np.repeat(facs_rows[:, :, None], C, axis=2), (1, 2, 0))
    fac_nc = fac_nc.reshape(NC, cutn).astype(np.float32)                   # (NC, cutn)
    kpad = 8
    fac_pad = np.zeros((NC, kpad), dtype=np.float32)
    fac_pad[:, :cutn] = fac_nc
    expand = np.zeros((kpad, cutn * css), dtype=np.float32)
    expand[:cutn] = np.kron(np.eye(cutn), np.ones((1, css)))
    fac_pad = jnp.asarray(fac_pad)
    expand = jnp.asarray(expand)

    # Gaussian noise, generated directly in the kernel's lane-dense layout.
    noise = jax.random.normal(k_noise, (NC, cutn * css), dtype=jnp.float32)

    out = make_cutouts(x, kt, fac_pad, expand, noise, cut_size, cutn)
    out = jax.block_until_ready(out)

    # Pure-JAX reference using the SEPARABLE (non-Kronecker) per-cutout matrices:
    # validates both the kernel math and the host-side Kronecker fold / layout plumbing.
    xf = x.reshape(NC, H, W)
    a_h_j = jnp.asarray(a_h.astype(np.float32))
    a_wt_j = jnp.asarray(np.transpose(a_w, (0, 2, 1)).astype(np.float32))
    hi = jax.lax.Precision.HIGHEST
    tmp = jnp.einsum('kah,nhw->knaw', a_h_j, xf, precision=hi)
    ref = jnp.einsum('knaw,kwb->knab', tmp, a_wt_j, precision=hi)          # (cutn, NC, cs, cs)
    noise_k = noise.reshape(NC, cutn, cut_size, cut_size).transpose(1, 0, 2, 3)
    ref = jnp.clip(ref, 0.0, 1.0) + jnp.asarray(fac_nc.T)[:, :, None, None] * noise_k
    ref = ref.reshape(cutn * N, C, cut_size, cut_size)
    np.testing.assert_allclose(np.asarray(out), np.asarray(ref), rtol=5e-5, atol=5e-5)

    assert out.shape == (cutn * N, C, cut_size, cut_size)
    print("KERNEL_OK")
</pallas_src>

<mosaic_0001>
module attributes {stable_mosaic.version = 11 : i64} {
  func.func @_cutout_kernel(%arg0: memref<6x256xf32, #tpu.memory_space<vmem>>, %arg1: memref<256x256xf32, #tpu.memory_space<vmem>>, %arg2: memref<6x8xf32, #tpu.memory_space<vmem>>, %arg3: memref<8x256xf32, #tpu.memory_space<vmem>>, %arg4: memref<6x256xf32, #tpu.memory_space<vmem>>, %arg5: memref<6x256xf32, #tpu.memory_space<vmem>>) attributes {dimension_semantics = [], scalar_prefetch = 0 : i64, scratch_operands = 0 : i64, tpu.core_type = #tpu.core_type<tc>} {
    %c0 = arith.constant 0 : index
    %c0_0 = arith.constant 0 : index
    %0 = vector.load %arg0[%c0, %c0_0] : memref<6x256xf32, #tpu.memory_space<vmem>>, vector<6x256xf32>
    %c0_1 = arith.constant 0 : index
    %c0_2 = arith.constant 0 : index
    %1 = vector.load %arg1[%c0_1, %c0_2] : memref<256x256xf32, #tpu.memory_space<vmem>>, vector<256x256xf32>
    %cst = arith.constant dense<0.000000e+00> : vector<6x256xf32>
    %2 = tpu.matmul %0, %1, %cst {dimension_numbers = #tpu.dot_dimension_numbers<[1], [0], [0], [1], [0, 0, 1, 1], [], []>} : vector<6x256xf32>, vector<256x256xf32>, vector<6x256xf32> -> vector<6x256xf32>
    %cst_3 = arith.constant 0.000000e+00 : f32
    %cst_4 = arith.constant 1.000000e+00 : f32
    %3 = vector.broadcast %cst_3 : f32 to vector<6x256xf32>
    %4 = arith.maximumf %3, %2 : vector<6x256xf32>
    %5 = vector.broadcast %cst_4 : f32 to vector<6x256xf32>
    %6 = arith.minimumf %5, %4 : vector<6x256xf32>
    %c0_5 = arith.constant 0 : index
    %c0_6 = arith.constant 0 : index
    %7 = vector.load %arg2[%c0_5, %c0_6] : memref<6x8xf32, #tpu.memory_space<vmem>>, vector<6x8xf32>
    %c0_7 = arith.constant 0 : index
    %c0_8 = arith.constant 0 : index
    %8 = vector.load %arg3[%c0_7, %c0_8] : memref<8x256xf32, #tpu.memory_space<vmem>>, vector<8x256xf32>
    %cst_9 = arith.constant dense<0.000000e+00> : vector<6x256xf32>
    %9 = tpu.matmul %7, %8, %cst_9 {dimension_numbers = #tpu.dot_dimension_numbers<[1], [0], [0], [1], [0, 0, 1, 1], [], []>} : vector<6x8xf32>, vector<8x256xf32>, vector<6x256xf32> -> vector<6x256xf32>
    %c0_10 = arith.constant 0 : index
    %c0_11 = arith.constant 0 : index
    %10 = vector.load %arg4[%c0_10, %c0_11] : memref<6x256xf32, #tpu.memory_space<vmem>>, vector<6x256xf32>
    %11 = arith.mulf %9, %10 : vector<6x256xf32>
    %12 = arith.addf %6, %11 : vector<6x256xf32>
    %c0_12 = arith.constant 0 : index
    %c0_13 = arith.constant 0 : index
    %13 = vector.load %arg5[%c0_12, %c0_13] : memref<6x256xf32, #tpu.memory_space<vmem>>, vector<6x256xf32>
    tpu.vector_store %arg5[%c0_12, %c0_13], %12 {strides = array<i32>} : memref<6x256xf32, #tpu.memory_space<vmem>>, vector<6x256xf32>,
    return
  }
}

</mosaic_0001>

<bundles_post_ra>
// kernel: tpu_custom_call.1
= control target key start
LH: loop header
LB: loop body
LE: loop exit
PB: predicated region body
PF: predicated region fallthrough
CT: control target
= control target key end

     0   :  { %10 = vsyncpa [#allocation3], 0  ;;  %s650_s0 = inlined_call_operand.hbm [shape: f32[6,256], index: 0, kind: input, shape index: {}]   ;;  %s651_s1 = inlined_call_operand.hbm [shape: f32[256,256], index: 1, kind: input, shape index: {}]   ;;  %s652_s2 = inlined_call_operand.hbm [shape: f32[6,8], index: 2, kind: input, shape index: {}]   ;;  %s653_s3 = inlined_call_operand.hbm [shape: f32[8,256], index: 3, kind: input, shape index: {}]   ;;  %s654_s4 = inlined_call_operand.hbm [shape: f32[6,256], index: 4, kind: input, shape index: {}]   ;;  %s655_s5 = inlined_call_operand.hbm [shape: f32[6,256], index: 5, kind: output, shape index: {}]  }
   0x1   :  { %11 = vsyncpa [#allocation6], 0 }
   0x2   :  { %12 = vsyncpa [#allocation9], 0 }
   0x3   :  { %13 = vsyncpa [#allocation4], 0  ;;  %s539_s18 = smov [#allocation5]   ;;  %s399_s22 = scalar_lea.hbm %s651_s1, 8192 }
   0x4   :  { %s29_s19 = sshll.u32 %s539_s18, 4  ;;  %p400_p0 = scmp.ne.s32.totalorder %s651_s1, %s399_s22  ;;  %s30_s19 = int_to_ptr.vmem [resolvable:$true] %s29_s19 }
   0x5   :  { %p403_p1 = scmp.lt.u32.totalorder %s399_s22, %s651_s1 }
   0x7   :  { %p405_p2 = pnand %p403_p1, %p400_p0 }
   0x9   :  { %408 = shalt.err (!%p405_p2)
}
   0xa   :  { %s409_s27 = scalar_lea.vmem %s30_s19, 8192  ;;  %p414_p4 = scmp.lt.s32.totalorder %s30_s19, %s30_s19 }
   0xb   :  { %p410_p3 = scmp.ne.s32.totalorder %s30_s19, %s409_s27  ;;  %p415_p5 = scmp.lt.s32.totalorder %s409_s27, %s409_s27 }
   0xd   :  { %p416_p6 = por %p415_p5, %p414_p4 }
   0xf   :  { %p417_p7 = pnand %p416_p6, %p410_p3 }
  0x11   :  { %420 = shalt.err (!%p417_p7)
}
  0x12   :  { %s540_s28 = smov 256   ;;  %s541_s29 = smov 16  }
  0x13   :  { %35 = dma.hbm_to_vmem [thread:$0]  %s651_s1, 8192, %s30_s19, [#allocation6], %s540_s28, %s540_s28, %s541_s29  }
  0x14   :  { %s542_s7 = smov [#allocation8]   ;;  %s543_s9 = smov [#allocation2]  }
  0x15   :  { %s52_s8 = sshll.u32 %s542_s7, 4  ;;  %s20_s10 = sshll.u32 %s543_s9, 4  ;;  %s53_s8 = int_to_ptr.vmem [resolvable:$true] %s52_s8  ;;  %s21_s10 = int_to_ptr.vmem [resolvable:$true] %s20_s10 }
  0x16   :  { %s421_s13 = scalar_lea.hbm %s653_s3, 256 }
  0x17   :  { %p422_p8 = scmp.ne.s32.totalorder %s653_s3, %s421_s13  ;;  %p425_p9 = scmp.lt.u32.totalorder %s421_s13, %s653_s3 }
  0x19   :  { %p427_p10 = pnand %p425_p9, %p422_p8 }
  0x1b   :  { %430 = shalt.err (!%p427_p10)
}
  0x1c   :  { %s431_s1 = scalar_lea.vmem %s53_s8, 256  ;;  %p436_p12 = scmp.lt.s32.totalorder %s53_s8, %s53_s8 }
  0x1d   :  { %p432_p11 = scmp.ne.s32.totalorder %s53_s8, %s431_s1  ;;  %p437_p13 = scmp.lt.s32.totalorder %s431_s1, %s431_s1 }
  0x1f   :  { %p438_p0 = por %p437_p13, %p436_p12 }
  0x21   :  { %p439_p1 = pnand %p438_p0, %p432_p11 }
  0x23   :  { %442 = shalt.err (!%p439_p1)
}
  0x24   :  { %55 = dma.hbm_to_vmem [thread:$0]  %s653_s3, 256, %s53_s8, [#allocation9]  }
  0x25   :  { %s443_s22 = scalar_lea.hbm %s650_s0, 256 }
  0x26   :  { %p444_p2 = scmp.ne.s32.totalorder %s650_s0, %s443_s22  ;;  %p447_p3 = scmp.lt.u32.totalorder %s443_s22, %s650_s0 }
  0x28   :  { %p449_p4 = pnand %p447_p3, %p444_p2 }
  0x2a   :  { %452 = shalt.err (!%p449_p4)
}
  0x2b   :  { %s453_s27 = scalar_lea.vmem %s21_s10, 256  ;;  %p458_p6 = scmp.lt.s32.totalorder %s21_s10, %s21_s10 }
  0x2c   :  { %p454_p5 = scmp.ne.s32.totalorder %s21_s10, %s453_s27  ;;  %p459_p7 = scmp.lt.s32.totalorder %s453_s27, %s453_s27 }
  0x2e   :  { %p460_p8 = por %p459_p7, %p458_p6 }
  0x30   :  { %p461_p9 = pnand %p460_p8, %p454_p5 }
  0x32   :  { %464 = shalt.err (!%p461_p9)
}
  0x33   :  { %23 = dma.hbm_to_vmem [thread:$0]  %s650_s0, 256, %s21_s10, [#allocation3]  }
  0x34   :  { %s544_s29 = smov [#allocation7]   ;;  %s545_s6 = smov [#allocation10]  }
  0x35   :  { %s42_s30 = sshll.u32 %s544_s29, 4  ;;  %s62_s7 = sshll.u32 %s545_s6, 4  ;;  %s43_s30 = int_to_ptr.vmem [resolvable:$true] %s42_s30  ;;  %s63_s7 = int_to_ptr.vmem [resolvable:$true] %s62_s7 }
  0x36   :  { %s465_s11 = scalar_lea.hbm %s652_s2, 128 }
  0x37   :  { %p466_p10 = scmp.ne.s32.totalorder %s652_s2, %s465_s11  ;;  %p469_p11 = scmp.lt.u32.totalorder %s465_s11, %s652_s2 }
  0x39   :  { %p471_p12 = pnand %p469_p11, %p466_p10 }
  0x3b   :  { %474 = shalt.err (!%p471_p12)
}
  0x3c   :  { %s475_s0 = scalar_lea.vmem %s43_s30, 128  ;;  %p480_p0 = scmp.lt.s32.totalorder %s43_s30, %s43_s30 }
  0x3d   :  { %p476_p13 = scmp.ne.s32.totalorder %s43_s30, %s475_s0  ;;  %p481_p1 = scmp.lt.s32.totalorder %s475_s0, %s475_s0 }
  0x3f   :  { %p482_p2 = por %p481_p1, %p480_p0 }
  0x41   :  { %p483_p3 = pnand %p482_p2, %p476_p13 }
  0x43   :  { %486 = shalt.err (!%p483_p3)
}
  0x44   :  { %45 = dma.hbm_to_vmem [thread:$0]  %s652_s2, 128, %s43_s30, [#allocation6]  }
  0x45   :  { %s487_s18 = scalar_lea.hbm %s654_s4, 256 }
  0x46   :  { %p488_p4 = scmp.ne.s32.totalorder %s654_s4, %s487_s18  ;;  %p491_p5 = scmp.lt.u32.totalorder %s487_s18, %s654_s4 }
  0x48   :  { %p493_p6 = pnand %p491_p5, %p488_p4 }
  0x4a   :  { %496 = shalt.err (!%p493_p6)
}
  0x4b   :  { %s497_s23 = scalar_lea.vmem %s63_s7, 256  ;;  %p502_p8 = scmp.lt.s32.totalorder %s63_s7, %s63_s7 }
  0x4c   :  { %p498_p7 = scmp.ne.s32.totalorder %s63_s7, %s497_s23  ;;  %p503_p9 = scmp.lt.s32.totalorder %s497_s23, %s497_s23 }
  0x4e   :  { %p504_p10 = por %p503_p9, %p502_p8 }
  0x50   :  { %p505_p11 = pnand %p504_p10, %p498_p7 }
  0x52   :  { %508 = shalt.err (!%p505_p11)
}
  0x53   :  { %65 = dma.hbm_to_vmem [thread:$0]  %s654_s4, 256, %s63_s7, [#allocation9]  }
  0x54   :  { %531 = dma.done.wait [#allocation3], 256  }
  0x55   :  { %532 = vsyncadd [#allocation3], 4294967040 }
  0x56   :  { %533 = dma.done.wait [#allocation6], 8320  }
  0x57   :  { %534 = vsyncadd [#allocation6], 4294958976 }
  0x58   :  { %535 = dma.done.wait [#allocation9], 512  }
  0x59   :  { %536 = vsyncadd [#allocation9], 4294966784  ;;  %v546_v0 = vmov 0.0   ;;  %v84_v1 = vld [vmem:[#allocation5 + $0x8] sm:$0xff]  ;;  %v86_v2 = vld [vmem:[#allocation5 + $0x18] sm:$0xff]  ;;  %vm225_vm0 = vcmask 64512  }
  0x5a   :  { %293 = vmatprep.mubr.f32.mxu1 %v546_v0  ;;  %v83_v3 = vld [vmem:[#allocation5] sm:$0xff]  ;;  %v326_v4 = vpack.c.bf16 %v86_v2, %v84_v1  ;;  %v85_v5 = vld [vmem:[#allocation5 + $0x10] sm:$0xff]  ;;  %v88_v6 = vld [vmem:[#allocation5 + $0x28] sm:$0xff]  ;;  %s547_s4 = smov [#allocation11]  }
  0x5b   :  { %v90_v7 = vld [vmem:[#allocation5 + $0x38] sm:$0xff]  ;;  %v328_v8 = vpack.c.bf16 %v85_v5, %v83_v3  ;;  %v87_v10 = vld [vmem:[#allocation5 + $0x20] sm:$0xff]  ;;  %v89_v11 = vld [vmem:[#allocation5 + $0x30] sm:$0xff]  ;;  %s314_s25 = sshll.u32 %s547_s4, 4  ;;  %s315_s25 = int_to_ptr.vmem [resolvable:$true] %s314_s25 }
  0x5c   :  { %v330_v9 = vpack.c.bf16 %v90_v7, %v88_v6  ;;  %v92_v12 = vld [vmem:[#allocation5 + $0x48] sm:$0xff]  ;;  %327 = vmatprep.subr.bf16.mxu0 %v326_v4  ;;  %v94_v13 = vld [vmem:[#allocation5 + $0x58] sm:$0xff]  ;;  %v332_v14 = vpack.c.bf16 %v89_v11, %v87_v10  ;;  %v91_v16 = vld [vmem:[#allocation5 + $0x40] sm:$0xff]  ;;  %s509_s26 = scalar_lea.vmem %s315_s25, 256  ;;  %p514_p13 = scmp.lt.s32.totalorder %s315_s25, %s315_s25 }
  0x5d   :  { %329 = vmatpush1.bf16.msra.mxu0 %v328_v8  ;;  %v334_v15 = vpack.c.bf16 %v94_v13, %v92_v12  ;;  %v93_v17 = vld [vmem:[#allocation5 + $0x50] sm:$0xff]  ;;  %v96_v18 = vld [vmem:[#allocation5 + $0x68] sm:$0xff]  ;;  %v98_v19 = vld [vmem:[#allocation5 + $0x78] sm:$0xff]  ;;  %p510_p12 = scmp.ne.s32.totalorder %s315_s25, %s509_s26  ;;  %p515_p0 = scmp.lt.s32.totalorder %s509_s26, %s509_s26 }
  0x5e   :  { %331 = vmatprep.subr.bf16.mxu0 %v330_v9  ;;  %v336_v20 = vpack.c.bf16 %v93_v17, %v91_v16  ;;  %v338_v21 = vpack.c.bf16 %v98_v19, %v96_v18  ;;  %v95_v22 = vld [vmem:[#allocation5 + $0x60] sm:$0xff]  ;;  %v97_v23 = vld [vmem:[#allocation5 + $0x70] sm:$0xff]  ;;  %v100_v24 = vld [vmem:[#allocation5 + $0x88] sm:$0xff] }
  0x5f   :  { %v102_v25 = vld [vmem:[#allocation5 + $0x98] sm:$0xff]  ;;  %v340_v26 = vpack.c.bf16 %v97_v23, %v95_v22  ;;  %v99_v28 = vld [vmem:[#allocation5 + $0x80] sm:$0xff]  ;;  %v101_v29 = vld [vmem:[#allocation5 + $0x90] sm:$0xff]  ;;  %p516_p1 = por %p515_p0, %p514_p13 }
  0x60   :  { %v342_v27 = vpack.c.bf16 %v102_v25, %v100_v24  ;;  %v104_v30 = vld [vmem:[#allocation5 + $0xa8] sm:$0xff]  ;;  %v106_v31 = vld [vmem:[#allocation5 + $0xb8] sm:$0xff]  ;;  %v344_v32 = vpack.c.bf16 %v101_v29, %v99_v28  ;;  %v103_v34 = vld [vmem:[#allocation5 + $0xa0] sm:$0xff] }
  0x61   :  { %333 = vmatpush1.bf16.msra.mxu0 %v332_v14  ;;  %v346_v33 = vpack.c.bf16 %v106_v31, %v104_v30  ;;  %v105_v35 = vld [vmem:[#allocation5 + $0xb0] sm:$0xff]  ;;  %v108_v36 = vld [vmem:[#allocation5 + $0xc8] sm:$0xff]  ;;  %v110_v37 = vld [vmem:[#allocation5 + $0xd8] sm:$0xff]  ;;  %p517_p2 = pnand %p516_p1, %p510_p12 }
  0x62   :  { %335 = vmatprep.subr.bf16.mxu0 %v334_v15  ;;  %v348_v38 = vpack.c.bf16 %v105_v35, %v103_v34  ;;  %v107_v39 = vld [vmem:[#allocation5 + $0xc0] sm:$0xff]  ;;  %v109_v40 = vld [vmem:[#allocation5 + $0xd0] sm:$0xff]  ;;  %v350_v41 = vpack.c.bf16 %v110_v37, %v108_v36  ;;  %v112_v42 = vld [vmem:[#allocation5 + $0xe8] sm:$0xff] }
  0x63   :  { %v82_v43 = vld [vmem:[#allocation2 + $0x8] sm:$0x3f]  ;;  %v224_v44 = vld [vmem:[#allocation8 + $0x8] sm:$0xff]  ;;  %v223_v46 = vld [vmem:[#allocation8] sm:$0xff]  ;;  %v352_v48 = vpack.c.bf16 %v109_v40, %v107_v39 }
  0x64   :  { %v114_v45 = vld [vmem:[#allocation5 + $0xf8] sm:$0xff]  ;;  %211 = vmatprep.mubr.f32.mxu0 %v82_v43  ;;  %229 = vmatprep.subr.mxu1 %v224_v44  ;;  %v222_v47 = vld [vmem:[#allocation7] sm:$0x3f]  ;;  %v113_v51 = vld [vmem:[#allocation5 + $0xf0] sm:$0xff] }
  0x65   :  { %337 = vmatpush1.bf16.msra.mxu0 %v336_v20  ;;  %230 = vmatpush1.msra.mxu1 %v223_v46  ;;  %v354_v49 = vpack.c.bf16 %v114_v45, %v112_v42  ;;  %v111_v50 = vld [vmem:[#allocation5 + $0xe0] sm:$0xff]  ;;  %v116_v52 = vld [vmem:[#allocation5 + $0x108] sm:$0xff]  ;;  %v118_v53 = vld [vmem:[#allocation5 + $0x118] sm:$0xff] }
  0x66   :  { %339 = vmatprep.subr.bf16.mxu0 %v338_v21  ;;  %325 = vmatmul.mubr.msk.f32.vlgmr.msra.gmra.mrb[0].mxu1 %vm225_vm0, %v222_v47  ;;  %v356_v54 = vpack.c.bf16 %v113_v51, %v111_v50  ;;  %v358_v55 = vpack.c.bf16 %v118_v53, %v116_v52  ;;  %v115_v56 = vld [vmem:[#allocation5 + $0x100] sm:$0xff]  ;;  %v117_v57 = vld [vmem:[#allocation5 + $0x110] sm:$0xff]  ;;  %v120_v58 = vld [vmem:[#allocation5 + $0x128] sm:$0xff] }
  0x67   :  { %v122_v59 = vld [vmem:[#allocation5 + $0x138] sm:$0xff]  ;;  %v360_v60 = vpack.c.bf16 %v117_v57, %v115_v56  ;;  %v119_v62 = vld [vmem:[#allocation5 + $0x120] sm:$0xff]  ;;  %v121_v63 = vld [vmem:[#allocation5 + $0x130] sm:$0xff] }
  0x68   :  { %v362_v61 = vpack.c.bf16 %v122_v59, %v120_v58  ;;  %v124_v0 = vld [vmem:[#allocation5 + $0x148] sm:$0xff]  ;;  %v126_v1 = vld [vmem:[#allocation5 + $0x158] sm:$0xff]  ;;  %v364_v2 = vpack.c.bf16 %v121_v63, %v119_v62  ;;  %v123_v4 = vld [vmem:[#allocation5 + $0x140] sm:$0xff] }
  0x69   :  { %341 = vmatpush1.bf16.msra.mxu0 %v340_v26  ;;  %v366_v3 = vpack.c.bf16 %v126_v1, %v124_v0  ;;  %v125_v5 = vld [vmem:[#allocation5 + $0x150] sm:$0xff]  ;;  %v128_v6 = vld [vmem:[#allocation5 + $0x168] sm:$0xff]  ;;  %v130_v7 = vld [vmem:[#allocation5 + $0x178] sm:$0xff] }
  0x6a   :  { %343 = vmatprep.subr.bf16.mxu0 %v342_v27  ;;  %v368_v8 = vpack.c.bf16 %v125_v5, %v123_v4  ;;  %v370_v9 = vpack.c.bf16 %v130_v7, %v128_v6  ;;  %v127_v10 = vld [vmem:[#allocation5 + $0x160] sm:$0xff]  ;;  %v129_v11 = vld [vmem:[#allocation5 + $0x170] sm:$0xff]  ;;  %v132_v12 = vld [vmem:[#allocation5 + $0x188] sm:$0xff] }
  0x6b   :  { %v134_v13 = vld [vmem:[#allocation5 + $0x198] sm:$0xff]  ;;  %v372_v14 = vpack.c.bf16 %v129_v11, %v127_v10  ;;  %v131_v16 = vld [vmem:[#allocation5 + $0x180] sm:$0xff]  ;;  %v133_v17 = vld [vmem:[#allocation5 + $0x190] sm:$0xff] }
  0x6c   :  { %v374_v15 = vpack.c.bf16 %v134_v13, %v132_v12  ;;  %v136_v18 = vld [vmem:[#allocation5 + $0x1a8] sm:$0xff]  ;;  %v138_v19 = vld [vmem:[#allocation5 + $0x1b8] sm:$0xff]  ;;  %v376_v20 = vpack.c.bf16 %v133_v17, %v131_v16  ;;  %v135_v22 = vld [vmem:[#allocation5 + $0x1a0] sm:$0xff] }
  0x6d   :  { %345 = vmatpush1.bf16.msra.mxu0 %v344_v32  ;;  %v378_v21 = vpack.c.bf16 %v138_v19, %v136_v18  ;;  %v137_v23 = vld [vmem:[#allocation5 + $0x1b0] sm:$0xff]  ;;  %v140_v24 = vld [vmem:[#allocation5 + $0x1c8] sm:$0xff]  ;;  %v142_v25 = vld [vmem:[#allocation5 + $0x1d8] sm:$0xff] }
  0x6e   :  { %347 = vmatprep.subr.bf16.mxu0 %v346_v33  ;;  %v380_v26 = vpack.c.bf16 %v137_v23, %v135_v22  ;;  %v382_v27 = vpack.c.bf16 %v142_v25, %v140_v24  ;;  %v139_v28 = vld [vmem:[#allocation5 + $0x1c0] sm:$0xff]  ;;  %v141_v29 = vld [vmem:[#allocation5 + $0x1d0] sm:$0xff]  ;;  %v144_v30 = vld [vmem:[#allocation5 + $0x1e8] sm:$0xff] }
  0x6f   :  { %v146_v31 = vld [vmem:[#allocation5 + $0x1f8] sm:$0xff]  ;;  %v384_v32 = vpack.c.bf16 %v141_v29, %v139_v28  ;;  %v143_v34 = vld [vmem:[#allocation5 + $0x1e0] sm:$0xff]  ;;  %v145_v35 = vld [vmem:[#allocation5 + $0x1f0] sm:$0xff] }
  0x70   :  { %v386_v33 = vpack.c.bf16 %v146_v31, %v144_v30  ;;  %v388_v36 = vpack.c.bf16 %v145_v35, %v143_v34  ;;  %v81_v37 = vld [vmem:[#allocation2] sm:$0x3f]  ;;  %v300_v40 = vld [vmem:[#allocation10] sm:$0x3f] }
  0x71   :  { %349 = vmatpush1.bf16.msra.mxu0 %v348_v38 }
  0x72   :  { %351 = vmatprep.subr.bf16.mxu0 %v350_v41  ;;  %v301_v41 = vld [vmem:[#allocation10 + $0x8] sm:$0x3f] }
  0x75   :  { %353 = vmatpush1.bf16.msra.mxu0 %v352_v48 }
  0x76   :  { %355 = vmatprep.subr.bf16.mxu0 %v354_v49 }
  0x79   :  { %357 = vmatpush1.bf16.msra.mxu0 %v356_v54 }
  0x7a   :  { %359 = vmatprep.subr.bf16.mxu0 %v358_v55 }
  0x7d   :  { %361 = vmatpush1.bf16.msra.mxu0 %v360_v60 }
  0x7e   :  { %363 = vmatprep.subr.bf16.mxu0 %v362_v61 }
  0x81   :  { %365 = vmatpush1.bf16.msra.mxu0 %v364_v2 }
  0x82   :  { %367 = vmatprep.subr.bf16.mxu0 %v366_v3 }
  0x85   :  { %369 = vmatpush1.bf16.msra.mxu0 %v368_v8 }
  0x86   :  { %371 = vmatprep.subr.bf16.mxu0 %v370_v9 }
  0x89   :  { %373 = vmatpush1.bf16.msra.mxu0 %v372_v14 }
  0x8a   :  { %375 = vmatprep.subr.bf16.mxu0 %v374_v15 }
  0x8d   :  { %377 = vmatpush1.bf16.msra.mxu0 %v376_v20 }
  0x8e   :  { %379 = vmatprep.subr.bf16.mxu0 %v378_v21 }
  0x91   :  { %381 = vmatpush1.bf16.msra.mxu0 %v380_v26 }
  0x92   :  { %383 = vmatprep.subr.bf16.mxu0 %v382_v27 }
  0x95   :  { %385 = vmatpush1.bf16.msra.mxu0 %v384_v32 }
  0x96   :  { %387 = vmatprep.subr.bf16.mxu0 %v386_v33 }
  0x99   :  { %389 = vmatpush1.bf16.msra.mxu0 %v388_v36 }
  0x9c   :  { %212 = vmatmul.mubr.f32.vlgmr.msra.gmra.mrb[0].mxu0 %v81_v37 }
 0x139   :  { %v295_v38 = vpop.f32.mrb[0].mxu1 }
 0x13a   :  { %v297_v39 = vpop.f32.mrb[1].mxu1  ;;  %v302_v45 = vmul.f32 %v300_v40, %v295_v38 }
 0x13b   :  { %v303_v47 = vmul.f32 %v301_v41, %v297_v39 }
 0x16f   :  { %v213_v42 = vpop.f32.mrb[0].mxu0 }
 0x170   :  { %v218_v43 = vmax.f32 %v213_v42, 0.0  ;;  %v215_v44 = vpop.f32.mrb[1].mxu0 }
 0x171   :  { %v219_v46 = vmax.f32 %v215_v44, 0.0 }
 0x172   :  { %v220_v48 = vmin.f32 %v218_v43, 1.0 }
 0x173   :  { %v221_v49 = vmin.f32 %v219_v46, 1.0 }
 0x174   :  { %v304_v50 = vadd.f32 %v302_v45, %v220_v48 }
 0x175   :  { %v305_v51 = vadd.f32 %v303_v47, %v221_v49 }
 0x176   :  { %306 = vst [vmem:[#allocation11] sm:$0x3f] %v304_v50 }
 0x177   :  { %307 = vst [vmem:[#allocation11 + $0x8] sm:$0x3f] %v305_v51 }
 0x178   :  { %520 = shalt.err (!%p517_p2)
}
 0x179   :  { %s521_s28 = scalar_lea.hbm %s655_s5, 256 }
 0x17a   :  { %p522_p3 = scmp.ne.s32.totalorder %s655_s5, %s521_s28  ;;  %p525_p4 = scmp.lt.u32.totalorder %s521_s28, %s655_s5 }
 0x17c   :  { %p527_p5 = pnand %p525_p4, %p522_p3 }
 0x17e   :  { %530 = shalt.err (!%p527_p5)
}
 0x17f   :  { %317 = dma.vmem_to_hbm [thread:$0]  %s315_s25, 256, %s655_s5, [#allocation4]  }
 0x180   :  { %537 = dma.done.wait [#allocation4], 256  }
 0x181   :  { %538 = vsyncadd [#allocation4], 4294967040 }
 0x182   :  { %321 = vsyncpa [#allocation3], 1 }
 0x183   :  { %322 = vsyncpa [#allocation6], 1 }
 0x184   :  { %323 = vsyncpa [#allocation9], 1 }
 0x185   :  { %324 = vsyncpa [#allocation4], 1 }

</bundles_post_ra>
